<compile_context>
chip_gen: v6e
topology: v6e:2x2x1
jax: 0.10.0
libtpu: 0.0.40
codegen_flags: <defaults>
</compile_context>

<pallas_src>
import jax
import jax.numpy as jnp
from jax import lax
from jax.experimental import pallas as pl
from jax.experimental.pallas import tpu as pltpu


def _round_up(x: int, m: int) -> int:
    return ((x + m - 1) // m) * m


def _sublane_multiple(dtype) -> int:
    # sublane packing for the streamed input dtype (f32:8, bf16:16, int8:32)
    return {1: 32, 2: 16, 4: 8}.get(jnp.dtype(dtype).itemsize, 8)


def perceptual_loss(predictions: jax.Array,
                    targets: jax.Array,
                    weight: jax.Array,
                    bias: jax.Array | None = None,
                    *,
                    tm: int | None = None) -> jax.Array:
    """Perceptual loss scalar via a tiled Pallas TPU kernel.

    predictions, targets: (B, S, D) pose sequences (streamed in native dtype)
    weight: (D, N) feature-extractor weight (kept resident in VMEM as bf16)
    bias:   (N,)   feature-extractor bias -- accepted for API parity, but it
            cancels exactly in the feature difference so it is never used.
    Returns a float32 scalar: mean((pred @ W + b - (tgt @ W + b))**2).
    """
    assert predictions.shape == targets.shape
    B, S, D = predictions.shape
    D_w, N = weight.shape
    assert D_w == D
    M = B * S

    in_itemsize = jnp.dtype(predictions.dtype).itemsize
    sub = _sublane_multiple(predictions.dtype)

    # Lane-dense feature dim: pad W with zero columns (they contribute exactly
    # 0 to the squared sum). Weight is tiny, so this pad is negligible.
    n_pad = _round_up(N, 128)
    w = weight.astype(jnp.bfloat16)
    if n_pad != N:
        w = jnp.pad(w, ((0, 0), (0, n_pad - N)))

    # Per-generation VMEM budget (v7x: 64 MiB physical -> ~48 MiB;
    # v5e/v6e: 128 MiB -> ~96 MiB).
    try:
        vmem_cap = int(pltpu.get_tpu_info().vmem_capacity_bytes)
    except Exception:
        vmem_cap = 64 << 20
    budget = (vmem_cap * 3) // 4

    # Per-row VMEM footprint: 2 streamed inputs x 2 pipeline buffers, plus the
    # f32 diff, its bf16 copy, and ~2 live f32 copies of the (row, n_pad)
    # matmul result (f and f*f).
    per_row = (2 * 2 * D * in_itemsize) + (D * 4) + (D * 2) + (2 * n_pad * 4)
    fixed = D * n_pad * 2 * 2 + (2 << 20)  # resident weight (2 bufs) + slack
    tm_budget = max(sub, (budget - fixed) // per_row)
    # Target >= ~2 MiB per streamed input block to amortize per-step overhead.
    tm_ideal = max(1024, (2 << 20) // max(1, D * in_itemsize))

    tm = min(tm_ideal if tm is None else int(tm), tm_budget)
    tm = max(sub, _round_up(tm, sub))
    if tm >= M:
        if M > 2 * sub:
            # Keep >= 2 grid steps so "parallel" shards across v7x's 2 TCs.
            tm = _round_up(pl.cdiv(M, 2), sub)
        else:
            tm = M  # single full-extent tile (no (8,128) constraint applies)
    num_tiles = pl.cdiv(M, tm)

    pred2 = predictions.reshape(M, D)   # metadata-only reshape, no HBM pass
    tgt2 = targets.reshape(M, D)

    needs_mask = (M % tm) != 0          # static: only emit the mask if ragged

    def kernel(pred_ref, tgt_ref, w_ref, out_ref):
        # Bias cancels in (f_pred - f_tgt); fuse the two projections into one.
        d = pred_ref[...].astype(jnp.float32) - tgt_ref[...].astype(jnp.float32)
        if needs_mask:
            # Rows past the array end in the last (ragged) block are
            # unspecified -> zero them so they contribute 0 to the sum.
            valid = M - pl.program_id(0) * tm
            rows = lax.broadcasted_iota(jnp.int32, d.shape, 0)
            d = jnp.where(rows < valid, d, 0.0)
        # bf16 x bf16 MXU matmul with f32 accumulation.
        f = jnp.dot(d.astype(jnp.bfloat16), w_ref[...],
                    preferred_element_type=jnp.float32)
        # Sublane-only reduce per tile (lane-dense store of n_pad partials);
        # the single cross-lane reduce + divide happens once in the wrapper.
        out_ref[...] = jnp.sum(f * f, axis=0)[None, None, :]

    partials = pl.pallas_call(
        kernel,
        out_shape=jax.ShapeDtypeStruct((num_tiles, 1, n_pad), jnp.float32),
        grid=(num_tiles,),
        in_specs=[
            pl.BlockSpec((tm, D), lambda i: (i, 0)),     # predictions tile
            pl.BlockSpec((tm, D), lambda i: (i, 0)),     # targets tile
            pl.BlockSpec((D, n_pad), lambda i: (0, 0)),  # weight (resident)
        ],
        out_specs=pl.BlockSpec((1, 1, n_pad), lambda i: (i, 0, 0)),
        compiler_params=pltpu.CompilerParams(
            dimension_semantics=("parallel",),
            vmem_limit_bytes=int(budget),
        ),
    )(pred2, tgt2, w)

    # Tiny final reduce + divide by the TRUE element count (not padded).
    return jnp.sum(partials) / jnp.float32(M * N)


if __name__ == "__main__":
    # Small pose-sequence shapes; D chosen lane-dense (128), N=96 exercises
    # the zero-column padding path, S=17 exercises the ragged last tile.
    B, S, D, N = 2, 17, 128, 96

    key = jax.random.PRNGKey(0)
    k_pred, k_tgt, k_w, k_b = jax.random.split(key, 4)

    predictions = jax.random.normal(k_pred, (B, S, D), dtype=jnp.float32)
    targets = jax.random.normal(k_tgt, (B, S, D), dtype=jnp.float32)

    # Deterministic synthetic "pre-trained" feature extractor parameters.
    weight = jax.random.normal(k_w, (D, N), dtype=jnp.float32) * 0.1
    bias = jax.random.normal(k_b, (N,), dtype=jnp.float32) * 0.01

    # Auto tile size (2 tiles, ragged last) and a forced tiny tile (5 tiles).
    loss_auto = jax.block_until_ready(
        perceptual_loss(predictions, targets, weight, bias))
    loss_small = jax.block_until_ready(
        perceptual_loss(predictions, targets, weight, bias, tm=8))

    # Reference emulating the kernel's numerics (f32 diff, bf16 MXU operands,
    # f32 accumulation).
    p2 = predictions.reshape(-1, D)
    t2 = targets.reshape(-1, D)
    d_bf = (p2 - t2).astype(jnp.bfloat16).astype(jnp.float32)
    w_bf = weight.astype(jnp.bfloat16).astype(jnp.float32)
    ref_bf16 = jnp.mean((d_bf @ w_bf) ** 2)

    # Pure-f32 semantic reference (includes the bias, which cancels exactly).
    f_pred = p2 @ weight + bias
    f_tgt = t2 @ weight + bias
    ref_f32 = jnp.mean((f_pred - f_tgt) ** 2)

    assert jnp.allclose(loss_auto, ref_bf16, rtol=1e-3, atol=1e-6), (
        loss_auto, ref_bf16)
    assert jnp.allclose(loss_small, ref_bf16, rtol=1e-3, atol=1e-6), (
        loss_small, ref_bf16)
    assert jnp.allclose(loss_auto, ref_f32, rtol=5e-2), (loss_auto, ref_f32)
    assert jnp.allclose(loss_small, ref_f32, rtol=5e-2), (loss_small, ref_f32)

    print("KERNEL_OK")
</pallas_src>

<mosaic_0001>
module attributes {stable_mosaic.version = 11 : i64} {
  func.func @kernel(%arg0: i32, %arg1: memref<24x128xf32, #tpu.memory_space<vmem>>, %arg2: memref<24x128xf32, #tpu.memory_space<vmem>>, %arg3: memref<128x128xbf16, #tpu.memory_space<vmem>>, %arg4: memref<1x1x128xf32, #tpu.memory_space<vmem>>) attributes {dimension_semantics = [#tpu.dimension_semantics<parallel>], iteration_bounds = array<i64: 2>, scalar_prefetch = 0 : i64, scratch_operands = 0 : i64, tpu.core_type = #tpu.core_type<tc>, window_params = [{transform_indices = @transform_0, window_bounds = array<i64: 24, 128>}, {transform_indices = @transform_1, window_bounds = array<i64: 24, 128>}, {pipeline_mode = #tpu.pipeline_mode<synchronous>, transform_indices = @transform_2, window_bounds = array<i64: 128, 128>}, {transform_indices = @transform_3, window_bounds = array<i64: 1, 1, 128>}]} {
    %c0 = arith.constant 0 : index
    %c0_0 = arith.constant 0 : index
    %0 = vector.load %arg1[%c0, %c0_0] : memref<24x128xf32, #tpu.memory_space<vmem>>, vector<24x128xf32>
    %c0_1 = arith.constant 0 : index
    %c0_2 = arith.constant 0 : index
    %1 = vector.load %arg2[%c0_1, %c0_2] : memref<24x128xf32, #tpu.memory_space<vmem>>, vector<24x128xf32>
    %2 = arith.subf %0, %1 : vector<24x128xf32>
    %c24_i32 = arith.constant 24 : i32
    %3 = arith.muli %arg0, %c24_i32 : i32
    %c34_i32 = arith.constant 34 : i32
    %4 = arith.subi %c34_i32, %3 : i32
    %5 = tpu.iota {dimensions = array<i32: 0>} : vector<24x128xi32>
    %6 = vector.broadcast %4 : i32 to vector<24x128xi32>
    %7 = arith.cmpi slt, %5, %6 : vector<24x128xi32>
    %cst = arith.constant 0.000000e+00 : f32
    %8 = vector.broadcast %cst : f32 to vector<24x128xf32>
    %9 = arith.select %7, %2, %8 : vector<24x128xi1>, vector<24x128xf32>
    %10 = arith.truncf %9 : vector<24x128xf32> to vector<24x128xbf16>
    %c0_3 = arith.constant 0 : index
    %c0_4 = arith.constant 0 : index
    %11 = vector.load %arg3[%c0_3, %c0_4] : memref<128x128xbf16, #tpu.memory_space<vmem>>, vector<128x128xbf16>
    %cst_5 = arith.constant dense<0.000000e+00> : vector<24x128xf32>
    %12 = tpu.matmul %10, %11, %cst_5 {dimension_numbers = #tpu.dot_dimension_numbers<[1], [0], [0], [1], [0, 0, 1, 1], [], []>} : vector<24x128xbf16>, vector<128x128xbf16>, vector<24x128xf32> -> vector<24x128xf32>
    %13 = arith.mulf %12, %12 : vector<24x128xf32>
    %cst_6 = arith.constant dense<0.000000e+00> : vector<128xf32>
    %14 = vector.multi_reduction <add>, %13, %cst_6 [0] : vector<24x128xf32> to vector<128xf32>
    %15 = vector.shape_cast %14 : vector<128xf32> to vector<1x1x128xf32>
    %c0_7 = arith.constant 0 : index
    %c0_8 = arith.constant 0 : index
    %c0_9 = arith.constant 0 : index
    %16 = vector.load %arg4[%c0_7, %c0_8, %c0_9] : memref<1x1x128xf32, #tpu.memory_space<vmem>>, vector<1x1x128xf32>
    tpu.vector_store %arg4[%c0_7, %c0_8, %c0_9], %15 {strides = array<i32>} : memref<1x1x128xf32, #tpu.memory_space<vmem>>, vector<1x1x128xf32>,
    return
  }
  func.func @transform_0(%arg0: i32) -> (i32, i32) {
    %c0_i32 = arith.constant 0 : i32
    %c0_i32_0 = arith.constant 0 : i32
    return %arg0, %c0_i32 : i32, i32
  }
  func.func @transform_1(%arg0: i32) -> (i32, i32) {
    %c0_i32 = arith.constant 0 : i32
    %c0_i32_0 = arith.constant 0 : i32
    return %arg0, %c0_i32 : i32, i32
  }
  func.func @transform_2(%arg0: i32) -> (i32, i32) {
    %c0_i32 = arith.constant 0 : i32
    %c0_i32_0 = arith.constant 0 : i32
    %c0_i32_1 = arith.constant 0 : i32
    return %c0_i32, %c0_i32_0 : i32, i32
  }
  func.func @transform_3(%arg0: i32) -> (i32, i32, i32) {
    %c0_i32 = arith.constant 0 : i32
    %c0_i32_0 = arith.constant 0 : i32
    %c0_i32_1 = arith.constant 0 : i32
    return %arg0, %c0_i32, %c0_i32_0 : i32, i32, i32
  }
}

</mosaic_0001>

<bundles_post_ra>
// kernel: tpu_custom_call.1
= control target key start
LH: loop header
LB: loop body
LE: loop exit
PB: predicated region body
PF: predicated region fallthrough
CT: control target
= control target key end

     0   :  { %8 = vsyncpa [#allocation3], 0  ;;  %s1068_s0 = inlined_call_operand.hbm [shape: f32[34,128], index: 0, kind: input, shape index: {}]   ;;  %s1069_s1 = inlined_call_operand.hbm [shape: f32[34,128], index: 1, kind: input, shape index: {}]   ;;  %s1070_s2 = inlined_call_operand.hbm [shape: bf16[128,128], index: 2, kind: input, shape index: {}]   ;;  %s1071_s3 = inlined_call_operand.hbm [shape: f32[2,1,128], index: 3, kind: output, shape index: {}]  }
   0x1   :  { %10 = vsyncpa [#allocation3 + $0x1], 0 }
   0x2   :  { %11 = vsyncpa [#allocation6], 0 }
   0x3   :  { %13 = vsyncpa [#allocation6 + $0x1], 0 }
   0x4   :  { %14 = vsyncpa [#allocation4], 0 }
   0x5   :  { %16 = vsyncpa [#allocation4 + $0x1], 0  ;;  %s840_s12 = smov 0   ;;  %s842_s13 = smov 0  }
   0x6   :  { %s844_s14 = smov 0   ;;  %s846_s15 = smov 0  }
   0x7 LB: > { %s861_s16 = sadd.s32 4294967295, %s808_s15   ;;  %s524_s17 = sadd.s32 4294967294, %s808_s15   ;;  %s808_s15 = sphi %s846_s15, %s1090_s15   ;;  %s804_s14 = sphi %s844_s14, %s1089_s14   ;;  %s800_s13 = sphi %s842_s13, %s1088_s13   ;;  %s796_s12 = sphi %s840_s12, %s1087_s12  }
   0x8   : > { %s865_s18 = sadd.s32 1, %s808_s15   ;;  %s29_s19 = sadd.s32 1, %s804_s14 }
   0x9   : > { %s26_s20 = ssub.s32 %s808_s15, %s865_s18  ;;  %p36_p0 = scmp.ne.s32.totalorder %s804_s14, %s800_s13 }
   0xa   : > { %p27_p1 = scmp.eq.s32.totalorder %s26_s20, 0  ;;  %p37_p2 = scmp.eq.s32.totalorder %s808_s15, 0 }
   0xb   : > { %p42_p3 = scmp.ne.s32.totalorder %s800_s13, %s796_s12  ;;  %p1075_p4 = scmp.eq.s32.totalorder %s861_s16, 0 }
   0xc   : > { %s877_s21 = scalar_select %p27_p1, %s804_s14, %s29_s19  }
   0xd   : > { %p879_p5 = por %p37_p2, %p36_p0  ;;  %p885_p6 = por %p1075_p4, %p42_p3 }
   0xe   : > { %p113_p7 = scmp.eq.s32.totalorder %s861_s16, 1  ;;  %p119_p8 = scmp.eq.s32.totalorder %s524_s17, 1 }
   0xf   : > { %s1077_s23 = scalar_select %p885_p6, 1, 0 }
  0x10   : > { %p525_p9 = scmp.ge.s32.totalorder %s808_s15, 1  ;;  %p126_p10 = scmp.lt.s32.totalorder %s808_s15, 3 }
  0x11   : > { %p892_p11 = por %p113_p7, %p36_p0  ;;  %p896_p12 = por %p119_p8, %p42_p3 }
  0x12   : > { %p900_p13 = pnand %p525_p9, %p126_p10  ;;  %s810_s27 = smov [#allocation7]  }
  0x13   : > { %s1078_s24 = scalar_select %p892_p11, 1, 0 }
  0x14   : > { %s1079_s25 = scalar_select %p896_p12, 1, 0 }
  0x15   : > { %p600_p1 = pneg %p900_p13  ;;  %s138_s28 = sshll.u32 %s810_s27, 4  ;;  %s139_s28 = int_to_ptr.vmem [resolvable:$true] %s138_s28 }
  0x16   : > { %s669_s29 = scalar_lea.vmem %s139_s28, 1024  ;;  %p677_p8 = scmp.lt.s32.totalorder %s139_s28, %s139_s28 }
  0x17   : > { %p601_p2 = pnand %p600_p1, %p1075_p4  ;;  %p670_p7 = scmp.ne.s32.totalorder %s139_s28, %s669_s29 }
  0x18   : > { %p678_p6 = scmp.lt.s32.totalorder %s669_s29, %s669_s29 }
  0x19   : > { %p660_p0 = pneg %p601_p2 }
  0x1a   : > { %p679_p12 = por %p678_p6, %p677_p8 }
  0x1b   : > { %p672_p11 = pnand %p670_p7, %p660_p0 }
  0x1d   : > { %p673_p3 = pneg %p672_p11 }
  0x1f   : > { %p680_p9 = pnand %p679_p12, %p673_p3 }
  0x21   : > { %683 = shalt.err (!%p680_p9)
}
  0x22   : > { %s811_s30 = smov 64   ;;  %s812_s4 = smov 4  }
  0x23   : > { %603 = dma.hbm_to_vmem [thread:$0]  (!%p601_p2), %s1070_s2, 1024, %s139_s28, [#allocation6], %s811_s30, %s811_s30, %s812_s4  }
  0x24   : > { %p1074_p10 = scmp.ge.s32.totalorder %s808_s15, 2 }
  0x26   : > { %148 = sbr.rel (%p1074_p10) target bundleno = 111 (0x6f), region = 20 }
  0x2b   : > { %151 = sbr.rel (!%p879_p5) target bundleno = 77 (0x4d), region = 24  ;;  %s152_s7 = sand.u32 (%p879_p5), 1, %s804_s14  }
  0x2c   : > { %s157_s8 = smul.u32 (%p879_p5), 3, %s808_s15  ;;  %s921_s19 = scalar_lea.sflag (%p879_p5), [#allocation3], %s152_s7 }
  0x2d   : > { %s589_s9 = smul.u32 (%p879_p5), 24, %s152_s7 }
  0x2e   : > { %s158_s10 = ssub.s32 (%p879_p5), 5, %s157_s8 }
  0x2f   : > { %p159_p6 = scmp.lt.s32.totalorder (%p879_p5), %s158_s10, 3  ;;  %s156_s20 = scalar_lea.vmem (%p879_p5), [#allocation2], %s589_s9 }
  0x31   : > { %s1092_s10 = smov (!%p159_p6, %s158_s10), 3 }
  0x32   : > { %s918_s11 = sshll.u32 %s1092_s10, 7 }
  0x33   : > { %s163_s17 = ssub.s32 384, %s918_s11 }
  0x34   : > { %164 = vsyncadd %s921_s19, %s163_s17  ;;  %p529_p11 = scmp.ne.s32.totalorder %s918_s11, 0  ;;  %s557_s27 = smul.u32 384, %s808_s15 }
  0x35   : > { %s169_s28 = sshll.u32 %s156_s20, 4  ;;  %s688_s8 = scalar_lea.hbm %s1068_s0, 640  ;;  %s931_s28 = int_to_ptr.vmem [resolvable:$true] %s169_s28 }
  0x36   : > { %s929_s4 = scalar_lea.hbm %s1068_s0, %s557_s27 }
  0x37   : > { %s684_s5 = scalar_lea.hbm %s929_s4, %s918_s11  ;;  %p689_p0 = scmp.lt.s32.totalorder %s929_s4, %s1068_s0 }
  0x38   : > { %p685_p12 = scmp.ne.s32.totalorder %s929_s4, %s684_s5  ;;  %p690_p7 = scmp.lt.s32.totalorder %s688_s8, %s684_s5 }
  0x3a   : > { %p686_p1 = pnand %p685_p12, %p529_p11  ;;  %p691_p3 = por %p690_p7, %p689_p0 }
  0x3c   : > { %p687_p2 = pneg %p686_p1 }
  0x3e   : > { %p692_p8 = pnand %p691_p3, %p687_p2 }
  0x40   : > { %695 = shalt.err (!%p692_p8)
}
  0x41   : > { %s696_s17 = scalar_lea.vmem %s931_s28, %s918_s11  ;;  %s813_s20 = smov [#allocation2]  }
  0x42   : > { %p697_p9 = scmp.ne.s32.totalorder %s931_s28, %s696_s17  ;;  %s700_s27 = sshll.u32 %s813_s20, 4  ;;  %s701_s27 = int_to_ptr.vmem [resolvable:$false] %s700_s27 }
  0x43   : > { %s702_s29 = scalar_lea.vmem %s701_s27, 768  ;;  %p703_p1 = scmp.lt.s32.totalorder %s931_s28, %s701_s27 }
  0x44   : > { %p698_p6 = pnand %p697_p9, %p529_p11  ;;  %p704_p10 = scmp.lt.s32.totalorder %s702_s29, %s696_s17 }
  0x46   : > { %p699_p12 = pneg %p698_p6  ;;  %p705_p4 = por %p704_p10, %p703_p1 }
  0x48   : > { %p706_p0 = pnand %p705_p4, %p699_p12 }
  0x4a   : > { %709 = shalt.err (!%p706_p0)
}
  0x4b   : > { %s814_s30 = smov 128   ;;  %s815_s5 = smov 8  }
  0x4c   : > { %175 = dma.hbm_to_vmem [thread:$0]  (%p529_p11), %s929_s4, %s918_s11, %s931_s28, %s921_s19, %s814_s30, %s814_s30, %s815_s5  }
  0x4d PF: > { %178 = sbr.rel (!%p879_p5) target bundleno = 111 (0x6f), region = 28  ;;  %s179_s6 = sand.u32 (%p879_p5), 1, %s808_s15  }
  0x4e   : > { %s181_s7 = sand.u32 (%p879_p5), 1, %s804_s14   ;;  %s184_s9 = smul.u32 (%p879_p5), 3, %s808_s15 }
  0x4f   : > { %s590_s8 = smul.u32 (%p879_p5), 24, %s181_s7  ;;  %s965_s27 = scalar_lea.sflag (%p879_p5), [#allocation6], %s179_s6 }
  0x50   : > { %s185_s10 = ssub.s32 (%p879_p5), 5, %s184_s9 }
  0x51   : > { %p186_p4 = scmp.lt.s32.totalorder (%p879_p5), %s185_s10, 3  ;;  %s183_s11 = scalar_lea.vmem (%p879_p5), [#allocation5], %s590_s8 }
  0x53   : > { %s1094_s10 = smov (!%p186_p4, %s185_s10), 3 }
  0x54   : > { %s962_s17 = sshll.u32 %s1094_s10, 7 }
  0x55   : > { %s190_s20 = ssub.s32 384, %s962_s17 }
  0x56   : > { %191 = vsyncadd %s965_s27, %s190_s20  ;;  %p534_p5 = scmp.ne.s32.totalorder %s962_s17, 0  ;;  %s558_s22 = smul.u32 384, %s808_s15 }
  0x57   : > { %s196_s19 = sshll.u32 %s183_s11, 4  ;;  %s714_s7 = scalar_lea.hbm %s1069_s1, 640  ;;  %s975_s19 = int_to_ptr.vmem [resolvable:$true] %s196_s19 }
  0x58   : > { %s973_s29 = scalar_lea.hbm %s1069_s1, %s558_s22 }
  0x59   : > { %s710_s30 = scalar_lea.hbm %s973_s29, %s962_s17  ;;  %p715_p7 = scmp.lt.s32.totalorder %s973_s29, %s1069_s1 }
  0x5a   : > { %p711_p10 = scmp.ne.s32.totalorder %s973_s29, %s710_s30  ;;  %p716_p3 = scmp.lt.s32.totalorder %s714_s7, %s710_s30 }
  0x5c   : > { %p712_p11 = pnand %p711_p10, %p534_p5  ;;  %p717_p8 = por %p716_p3, %p715_p7 }
  0x5e   : > { %p713_p2 = pneg %p712_p11 }
  0x60   : > { %p718_p9 = pnand %p717_p8, %p713_p2 }
  0x62   : > { %721 = shalt.err (!%p718_p9)
}
  0x63   : > { %s722_s10 = scalar_lea.vmem %s975_s19, %s962_s17  ;;  %s816_s20 = smov [#allocation5]  }
  0x64   : > { %p723_p6 = scmp.ne.s32.totalorder %s975_s19, %s722_s10  ;;  %s726_s11 = sshll.u32 %s816_s20, 4  ;;  %s727_s11 = int_to_ptr.vmem [resolvable:$false] %s726_s11 }
  0x65   : > { %s728_s22 = scalar_lea.vmem %s727_s11, 768  ;;  %p729_p0 = scmp.lt.s32.totalorder %s975_s19, %s727_s11 }
  0x66   : > { %p724_p12 = pnand %p723_p6, %p534_p5  ;;  %p730_p4 = scmp.lt.s32.totalorder %s728_s22, %s722_s10 }
  0x68   : > { %p725_p1 = pneg %p724_p12  ;;  %p731_p10 = por %p730_p4, %p729_p0 }
  0x6a   : > { %p732_p11 = pnand %p731_p10, %p725_p1 }
  0x6c   : > { %735 = shalt.err (!%p732_p11)
}
  0x6d   : > { %s817_s28 = smov 128   ;;  %s818_s4 = smov 8  }
  0x6e   : > { %202 = dma.hbm_to_vmem [thread:$0]  (%p534_p5), %s973_s29, %s962_s17, %s975_s19, %s965_s27, %s817_s28, %s817_s28, %s818_s4  }
  0x6f PF: > { %208 = sbr.rel (%p900_p13) target bundleno = 386 (0x182), region = 32  ;;  %s1004_s30 = sand.u32 (!%p900_p13), 1, %s800_s13  }
  0x70   : > { %s591_s5 = smul.u32 (!%p900_p13), 24, %s1004_s30  ;;  %s211_s6 = scalar_lea.sflag (!%p900_p13), [#allocation3], %s1004_s30 }
  0x71   : > { %p1081_p2 = scmp.ne.s32.totalorder (!%p900_p13), %s1077_s23, 0 }
  0x72   : > { %s1008_s7 = scalar_lea.vmem (!%p900_p13), [#allocation2], %s591_s5 }
  0x74   : > { %779 = dma.done.wait (%p1081_p2), %s211_s6, 384  }
  0x75   : > { %781 = vsyncadd (%p1081_p2), %s211_s6, 4294966912  ;;  %s219_s17 = sand.u32 1, %s861_s16   ;;  %s1015_s27 = scalar_lea.vmem [#allocation5], %s591_s5 }
  0x76   : > { %s220_s26 = scalar_lea.sflag [#allocation6], %s219_s17 }
  0x77   : > { %783 = dma.done.wait (%p1081_p2), %s220_s26, 384  }
  0x78   : > { %785 = vsyncadd (%p1081_p2), %s220_s26, 4294966912  ;;  %p1082_p13 = scmp.eq.s32.totalorder %s861_s16, 0 }
  0x7a   : > { %787 = dma.done.wait (%p1082_p13), [#allocation6], 1024   ;;  %p1083_p5 = pmov %p1082_p13 }
  0x7b   : > { %v276_v0 = vlaneseq  ;;  %s274_s19 = smul.u32 24, %s861_s16  ;;  %v650_v1 = vld [vmem:[#allocation7 + $0x38] sm:$0xff]   ;;  %v651_v3 = vld [vmem:[#allocation7 + $0x30] sm:$0xff]   ;;  %v652_v4 = vld [vmem:[#allocation7 + $0x28] sm:$0xff]   ;;  %s554_s23 = sshll.u32 %s861_s16, 4 }
  0x7c   : > { %789 = vsyncadd (%p1083_p5), [#allocation6], 4294966272  ;;  %569 = vmatprep.subr.bf16.mxu0 %v650_v1  ;;  %v653_v7 = vld [vmem:[#allocation7 + $0x20] sm:$0xff]   ;;  %v268_v10 = vld [vmem:[%s1015_s27] sm:$0xff]  ;;  %s253_s8 = scalar_lea.vmem [#allocation8], %s1004_s30  ;;  %s424_s11 = scalar_lea.hbm %s1071_s3, %s554_s23 }
  0x7d   : > { %v277_v2 = vshrl.u32 %v276_v0, 7  ;;  %s275_s29 = ssub.s32 34, %s274_s19  ;;  %570 = vmatpush3.bf16.msra.mxu0 %v650_v1  ;;  %v265_v8 = vld [vmem:[%s1008_s7] sm:$0xff]  ;;  %v266_v9 = vld [vmem:[%s1008_s7 + $0x8] sm:$0xff]  ;;  %v269_v11 = vld [vmem:[%s1015_s27 + $0x8] sm:$0xff]  ;;  %s426_s9 = sshll.u32 %s253_s8, 4  ;;  %s427_s9 = int_to_ptr.vmem [resolvable:$true] %s426_s9 }
  0x7e   : > { %571 = vmatprep.subr.bf16.mxu0 %v651_v3  ;;  %v280_v6 = vstv %s275_s29  ;;  %v271_v12 = vsub.f32 %v265_v8, %v268_v10  ;;  %v272_v13 = vsub.f32 %v266_v9, %v269_v11  ;;  %v654_v14 = vld [vmem:[#allocation7 + $0x18] sm:$0xff]   ;;  %v655_v16 = vld [vmem:[#allocation7 + $0x10] sm:$0xff]   ;;  %v656_v17 = vld [vmem:[#allocation7 + $0x8] sm:$0xff]   ;;  %s414_s22 = scalar_lea.sflag [#allocation4], %s1004_s30  ;;  %s736_s28 = scalar_lea.vmem %s427_s9, 16 }
  0x7f   : > { %v278_v5 = vadd.s32 8, %v277_v2  ;;  %vm281_vm0 = vcmp.lt.s32.totalorder %v277_v2, %v280_v6  ;;  %v267_v18 = vld [vmem:[%s1008_s7 + $0x10] sm:$0xff]  ;;  %v270_v19 = vld [vmem:[%s1015_s27 + $0x10] sm:$0xff]  ;;  %v279_v21 = vadd.s32 16, %v277_v2  ;;  %p737_p7 = scmp.ne.s32.totalorder %s427_s9, %s736_s28  ;;  %p1084_p3 = scmp.ne.s32.totalorder %s1078_s24, 0 }
  0x80   : > { %v549_v15 = vpack.c.bf16 %v272_v13, %v271_v12  ;;  %v657_v20 = vld [vmem:[#allocation7] sm:$0xff]   ;;  %v273_v22 = vsub.f32 %v267_v18, %v270_v19  ;;  %s819_s4 = smov [#allocation8]  }
  0x81   : > { %572 = vmatpush3.bf16.msra.mxu0 %v651_v3  ;;  %vm282_vm1 = vcmp.lt.s32.totalorder %v278_v5, %v280_v6  ;;  %vm283_vm3 = vcmp.lt.s32.totalorder %v279_v21, %v280_v6  ;;  %p738_p8 = pnand %p737_p7, %p1084_p3  ;;  %s740_s5 = sshll.u32 %s819_s4, 4  ;;  %s741_s5 = int_to_ptr.vmem [resolvable:$false] %s740_s5 }
  0x82   : > { %573 = vmatprep.subr.bf16.mxu0 %v652_v4  ;;  %vm548_vm2 = vmpackc.low %vm282_vm1, %vm281_vm0  ;;  %v552_v23 = vpack.c.bf16 %v273_v22, %v273_v22  ;;  %s742_s16 = scalar_lea.vmem %s741_s5, 32  ;;  %p743_p6 = scmp.lt.s32.totalorder %s427_s9, %s741_s5 }
  0x83   : > { %585 = vmatprep.mubr.msk.bf16.mxu0 %vm548_vm2, %v549_v15  ;;  %vm551_vm4 = vmpackc.low %vm283_vm3, %vm283_vm3  ;;  %p739_p9 = pneg %p738_p8  ;;  %p744_p12 = scmp.lt.s32.totalorder %s742_s16, %s736_s28 }
  0x85   : > { %574 = vmatpush3.bf16.msra.mxu0 %v652_v4  ;;  %p745_p1 = por %p744_p12, %p743_p6 }
  0x86   : > { %575 = vmatprep.subr.bf16.mxu0 %v653_v7 }
  0x87   : > { %p746_p0 = pnand %p745_p1, %p739_p9 }
  0x89   : > { %576 = vmatpush3.bf16.msra.mxu0 %v653_v7 }
  0x8a   : > { %577 = vmatprep.subr.bf16.mxu0 %v654_v14 }
  0x8d   : > { %578 = vmatpush3.bf16.msra.mxu0 %v654_v14 }
  0x8e   : > { %579 = vmatprep.subr.bf16.mxu0 %v655_v16 }
  0x91   : > { %580 = vmatpush3.bf16.msra.mxu0 %v655_v16 }
  0x92   : > { %581 = vmatprep.subr.bf16.mxu0 %v656_v17 }
  0x95   : > { %582 = vmatpush3.bf16.msra.mxu0 %v656_v17 }
  0x96   : > { %583 = vmatprep.subr.bf16.mxu0 %v657_v20 }
  0x99   : > { %584 = vmatpush3.bf16.msra.mxu0 %v657_v20 }
  0x9c   : > { %586 = vmatmul.mubr.msk.bf16.vlgmr.msra.gmra.mxu0 %vm551_vm4, %v552_v23 }
 0x15c   : > { %v587_v24 = vpop.f32.mrf.mxu0 }
 0x15d   : > { %v403_v30 = vmul.f32 %v587_v24, %v587_v24 }
 0x15e   : > { %v387_v25 = vpop.f32.mrf.mxu0 }
 0x15f   : > { %v401_v28 = vmul.f32 %v387_v25, %v387_v25 }
 0x160   : > { %v588_v26 = vpop.f32.mrf.mxu0 }
 0x162   : > { %v390_v27 = vpop.f32.mrf.mxu0 }
 0x163   : > { %v402_v29 = vmul.f32 %v390_v27, %v390_v27 }
 0x165   : > { %v404_v31 = vadd.f32 %v402_v29, %v401_v28 }
 0x167   : > { %v405_v32 = vadd.f32 %v404_v31, %v403_v30 }
 0x169   : > { %v406_v33 = vrot.slane %v405_v32, 4 }
 0x16b   : > { %v407_v34 = vadd.f32 %v406_v33, %v405_v32 }
 0x16d   : > { %v408_v35 = vrot.slane %v407_v34, 2 }
 0x16f   : > { %v409_v36 = vadd.f32 %v408_v35, %v407_v34 }
 0x171   : > { %v410_v37 = vrot.slane %v409_v36, 1 }
 0x173   : > { %v411_v38 = vadd.f32 %v410_v37, %v409_v36 }
 0x175   : > { %412 = vst [vmem:[%s253_s8] sm:$0x1] %v411_v38 }
 0x176   : > { %749 = shalt.err (!%p746_p0)
}
 0x177   : > { %s750_s6 = scalar_lea.hbm %s424_s11, 16  ;;  %s754_s17 = scalar_lea.hbm %s1071_s3, 32 }
 0x178   : > { %p751_p4 = scmp.ne.s32.totalorder %s424_s11, %s750_s6  ;;  %p755_p2 = scmp.lt.s32.totalorder %s424_s11, %s1071_s3 }
 0x179   : > { %p756_p13 = scmp.lt.s32.totalorder %s754_s17, %s750_s6 }
 0x17a   : > { %p752_p10 = pnand %p751_p4, %p1084_p3 }
 0x17b   : > { %p757_p5 = por %p756_p13, %p755_p2 }
 0x17c   : > { %p753_p11 = pneg %p752_p10 }
 0x17e   : > { %p758_p7 = pnand %p757_p5, %p753_p11 }
 0x180   : > { %761 = shalt.err (!%p758_p7)
}
 0x181   : > { %598 = dma.vmem_to_hbm [thread:$0]  (%p1084_p3), %s427_s9, 16, %s424_s11, %s414_s22  }
 0x182 PF: > { %s438_s19 = sand.u32 1, %s796_s12   ;;  %p1085_p8 = scmp.ne.s32.totalorder %s1079_s25, 0 }
 0x183   : > { %p1086_p9 = scmp.ge.s32.totalorder %s808_s15, 2  ;;  %s439_s29 = scalar_lea.sflag [#allocation4], %s438_s19 }
 0x185   : > { %p605_p6 = pnand %p1086_p9, %p1085_p8 }
 0x187   : > { %p606_p12 = pneg %p605_p6 }
 0x189   : > { %791 = dma.done.wait (%p606_p12), %s439_s29, 16  }
 0x18a   : > { %793 = vsyncadd (%p606_p12), %s439_s29, 4294967280  ;;  %p19_p1 = scmp.ge.s32.totalorder %s865_s18, 4   ;;  %s1087_s12 = smov %s800_s13 }
 0x18b   : > { %s1088_s13 = smov %s804_s14  ;;  %s1089_s14 = smov %s877_s21 }
 0x18c   : > { %s1090_s15 = smov %s865_s18  ;;  %21 = sbr.rel (!%p19_p1) target bundleno = 7 (0x7), region = 94 }
 0x191   :  { %443 = vsyncpa [#allocation3], 1 }
 0x192   :  { %445 = vsyncpa [#allocation3 + $0x1], 1 }
 0x193   :  { %446 = vsyncpa [#allocation6], 1 }
 0x194   :  { %448 = vsyncpa [#allocation6 + $0x1], 1 }
 0x195   :  { %449 = vsyncpa [#allocation4], 1 }
 0x196   :  { %451 = vsyncpa [#allocation4 + $0x1], 1 }

</bundles_post_ra>
